<compile_context>
chip_gen: v7x
topology: tpu7x:2x2x1
jax: 0.10.0
libtpu: 0.0.40
codegen_flags: <defaults>
</compile_context>

<pallas_src>
import functools

import jax
import jax.numpy as jnp
from jax.experimental import pallas as pl
from jax.experimental.pallas import tpu as pltpu


# ---------------------------------------------------------------------------
# Fused kernel.
#   x_ref   : (M, H)     input, node_dim zero-padded to H
#   w_ref   : (L, H, H)  stacked weights, L = num_blocks + 1 (last = out proj)
#   aux_ref : (2B+1, H)  rows [gamma_0, beta_0, ..., gamma_{B-1}, beta_{B-1}, b_last]
#   o_ref   : (M, H)     output, latent zero-padded to H
# ---------------------------------------------------------------------------
def _node_encoder_kernel(x_ref, w_ref, aux_ref, o_ref, *, num_blocks, eps, inv_m):
    h = x_ref[...].astype(jnp.float32)                      # (M, H)
    aux = aux_ref[...]                                      # (2B+1, H) f32

    for i in range(num_blocks):                             # static unroll
        w = w_ref[i]                                        # (H, H)
        # Linear (bias=False) on the MXU with f32 accumulation, then ReLU.
        h = jnp.dot(h.astype(w.dtype), w, preferred_element_type=jnp.float32)
        h = jnp.maximum(h, 0.0)

        # BatchNorm1d (training mode): one-pass batch statistics over M.
        s1 = jnp.sum(h, axis=0, keepdims=True)              # (1, H)
        s2 = jnp.sum(h * h, axis=0, keepdims=True)          # (1, H)
        mean = s1 * inv_m
        var = jnp.maximum(s2 * inv_m - mean * mean, 0.0)    # biased var; guard cancellation

        gamma = aux[2 * i:2 * i + 1, :]                     # (1, H)
        beta = aux[2 * i + 1:2 * i + 2, :]                  # (1, H)
        scale = gamma * jax.lax.rsqrt(var + eps)            # (1, H)
        shift = beta - mean * scale                         # (1, H)
        h = h * scale + shift                               # 2 ops / element

    w_last = w_ref[num_blocks]                              # (H, H)
    b_last = aux[2 * num_blocks:2 * num_blocks + 1, :]      # (1, H)
    o_ref[...] = (jnp.dot(h.astype(w_last.dtype), w_last,
                          preferred_element_type=jnp.float32) + b_last)


# ---------------------------------------------------------------------------
# Wrapper.
# ---------------------------------------------------------------------------
def node_encoder_forward(x, W, aux, *, node_latent_dim, eps=1e-5):
    """x: (b, s, n, node_dim) -> (b, s, n, node_latent_dim).

    W   : (L, H, H) stacked (padded) weights, L = num_blocks + 1
    aux : (2B+1, H) stacked gamma/beta/bias rows (f32)
    """
    b, s, n, d = x.shape
    m = b * s * n
    L, H, _ = W.shape
    num_blocks = L - 1

    x2 = x.reshape(m, d).astype(jnp.float32)
    if d < H:  # zero-pad features: no effect on a bias-free linear
        x2 = jnp.pad(x2, ((0, 0), (0, H - d)))

    vmem = pltpu.MemorySpace.VMEM
    flops = 2 * m * H * H * L + 8 * m * H * num_blocks
    bytes_accessed = (x2.size * x2.dtype.itemsize
                      + W.size * W.dtype.itemsize
                      + aux.size * aux.dtype.itemsize
                      + m * H * 4)

    out = pl.pallas_call(
        functools.partial(_node_encoder_kernel,
                          num_blocks=num_blocks, eps=eps, inv_m=1.0 / m),
        out_shape=jax.ShapeDtypeStruct((m, H), jnp.float32),
        in_specs=[pl.BlockSpec(memory_space=vmem)] * 3,
        out_specs=pl.BlockSpec(memory_space=vmem),
        cost_estimate=pl.CostEstimate(flops=flops,
                                      transcendentals=num_blocks * H,
                                      bytes_accessed=bytes_accessed),
    )(x2, W, aux)

    return out[:, :node_latent_dim].reshape(b, s, n, node_latent_dim)


# ---------------------------------------------------------------------------
# Parameter packing: pad + stack weights into (L,H,H); gamma/beta/bias into
# one (2B+1, H) slab.  Call once, reuse across forward calls.
# ---------------------------------------------------------------------------
def pack_params(params, hidden_dim, weight_dtype=jnp.float32):
    blocks = params["blocks"]
    w_last, b_last = params["w_last"], params["b_last"]
    latent = w_last.shape[1]
    assert latent <= hidden_dim, "packing assumes node_latent_dim <= hidden_dim"

    ws = []
    for blk in blocks:
        w = blk["w"]
        assert w.shape[0] <= hidden_dim, "packing assumes node_dim <= hidden_dim"
        if w.shape[0] < hidden_dim:
            w = jnp.pad(w, ((0, hidden_dim - w.shape[0]), (0, 0)))
        ws.append(w)
    wl = w_last
    bl = b_last
    if latent < hidden_dim:
        wl = jnp.pad(wl, ((0, 0), (0, hidden_dim - latent)))
        bl = jnp.pad(bl, ((0, 0), (0, hidden_dim - latent)))
    ws.append(wl)
    W = jnp.stack(ws).astype(weight_dtype)                    # (L, H, H)

    aux_rows = []
    for blk in blocks:
        aux_rows.extend([blk["gamma"], blk["beta"]])
    aux_rows.append(bl)
    aux = jnp.concatenate(aux_rows, axis=0).astype(jnp.float32)  # (2B+1, H)
    return W, aux


# ---------------------------------------------------------------------------
# Parameter init (deterministic, PyTorch-default-like distributions).
# Linear weights stored pre-transposed as (in, out).
# ---------------------------------------------------------------------------
def init_params(key, node_dim, hidden_dim, node_latent_dim, num_layers):
    num_blocks = num_layers - 1
    keys = jax.random.split(key, num_blocks + 2)

    def lin(k, fan_in, shape):
        bound = 1.0 / float(fan_in) ** 0.5
        return jax.random.uniform(k, shape, jnp.float32, -bound, bound)

    blocks = []
    for i in range(num_blocks):
        in_dim = node_dim if i == 0 else hidden_dim
        blocks.append({
            "w": lin(keys[i], in_dim, (in_dim, hidden_dim)),
            "gamma": jnp.ones((1, hidden_dim), jnp.float32),
            "beta": jnp.zeros((1, hidden_dim), jnp.float32),
        })
    w_last = lin(keys[num_blocks], hidden_dim, (hidden_dim, node_latent_dim))
    b_last = lin(keys[num_blocks + 1], hidden_dim, (1, node_latent_dim))
    return {"blocks": blocks, "w_last": w_last, "b_last": b_last}


# ---------------------------------------------------------------------------
# Pure-JAX reference (correctness check only).
# ---------------------------------------------------------------------------
def _ref_forward(x, params, eps=1e-5):
    b, s, n, d = x.shape
    h = x.reshape(b * s * n, d)
    for blk in params["blocks"]:
        h = jnp.maximum(h @ blk["w"], 0.0)
        mean = jnp.mean(h, axis=0, keepdims=True)
        var = jnp.mean((h - mean) ** 2, axis=0, keepdims=True)
        h = (h - mean) / jnp.sqrt(var + eps) * blk["gamma"] + blk["beta"]
    h = h @ params["w_last"] + params["b_last"]
    return h.reshape(b, s, n, -1)


if __name__ == "__main__":
    batch, seq_len, node_cnt = 2, 8, 16
    node_dim, hidden_dim, node_latent_dim, num_layers = 32, 128, 128, 3

    key = jax.random.PRNGKey(0)
    kx, kparam = jax.random.split(key)

    x = jax.random.normal(kx, (batch, seq_len, node_cnt, node_dim), jnp.float32)
    params = init_params(kparam, node_dim, hidden_dim, node_latent_dim, num_layers)
    ref = _ref_forward(x, params)

    fwd = jax.jit(node_encoder_forward, static_argnames=("node_latent_dim", "eps"))

    # 1) f32 MXU path — exact module semantics (also the v5e recommendation).
    W32, aux32 = pack_params(params, hidden_dim, weight_dtype=jnp.float32)
    out = jax.block_until_ready(fwd(x, W32, aux32, node_latent_dim=node_latent_dim))
    assert out.shape == (batch, seq_len, node_cnt, node_latent_dim), out.shape
    assert bool(jnp.all(jnp.isfinite(out)))
    assert bool(jnp.allclose(out, ref, rtol=1e-4, atol=1e-4))

    # 2) bf16 MXU-operand path (native high-throughput MXU on v6e/v7x; BN in f32).
    Wbf, auxbf = pack_params(params, hidden_dim, weight_dtype=jnp.bfloat16)
    out_bf = jax.block_until_ready(fwd(x, Wbf, auxbf, node_latent_dim=node_latent_dim))
    assert bool(jnp.all(jnp.isfinite(out_bf)))
    assert bool(jnp.allclose(out_bf, ref, rtol=5e-2, atol=5e-2))

    print("KERNEL_OK")
</pallas_src>

<mosaic_0001>
module attributes {stable_mosaic.version = 11 : i64} {
  func.func @_node_encoder_kernel(%arg0: memref<256x128xf32, #tpu.memory_space<vmem>>, %arg1: memref<3x128x128xf32, #tpu.memory_space<vmem>>, %arg2: memref<5x128xf32, #tpu.memory_space<vmem>>, %arg3: memref<256x128xf32, #tpu.memory_space<vmem>>) attributes {dimension_semantics = [], scalar_prefetch = 0 : i64, scratch_operands = 0 : i64, tpu.core_type = #tpu.core_type<tc>} {
    %c0 = arith.constant 0 : index
    %c0_0 = arith.constant 0 : index
    %0 = vector.load %arg0[%c0, %c0_0] : memref<256x128xf32, #tpu.memory_space<vmem>>, vector<256x128xf32>
    %c0_1 = arith.constant 0 : index
    %c0_2 = arith.constant 0 : index
    %1 = vector.load %arg2[%c0_1, %c0_2] : memref<5x128xf32, #tpu.memory_space<vmem>>, vector<5x128xf32>
    %c0_3 = arith.constant 0 : index
    %c0_4 = arith.constant 0 : index
    %c0_5 = arith.constant 0 : index
    %2 = vector.load %arg1[%c0_3, %c0_4, %c0_5] : memref<3x128x128xf32, #tpu.memory_space<vmem>>, vector<1x128x128xf32>
    %3 = vector.shape_cast %2 : vector<1x128x128xf32> to vector<128x128xf32>
    %cst = arith.constant dense<0.000000e+00> : vector<256x128xf32>
    %4 = tpu.matmul %0, %3, %cst {dimension_numbers = #tpu.dot_dimension_numbers<[1], [0], [0], [1], [0, 0, 1, 1], [], []>} : vector<256x128xf32>, vector<128x128xf32>, vector<256x128xf32> -> vector<256x128xf32>
    %cst_6 = arith.constant 0.000000e+00 : f32
    %5 = vector.broadcast %cst_6 : f32 to vector<256x128xf32>
    %6 = arith.maximumf %4, %5 : vector<256x128xf32>
    %cst_7 = arith.constant dense<0.000000e+00> : vector<128xf32>
    %7 = vector.multi_reduction <add>, %6, %cst_7 [0] : vector<256x128xf32> to vector<128xf32>
    %8 = vector.shape_cast %7 : vector<128xf32> to vector<1x128xf32>
    %9 = arith.mulf %6, %6 : vector<256x128xf32>
    %cst_8 = arith.constant dense<0.000000e+00> : vector<128xf32>
    %10 = vector.multi_reduction <add>, %9, %cst_8 [0] : vector<256x128xf32> to vector<128xf32>
    %11 = vector.shape_cast %10 : vector<128xf32> to vector<1x128xf32>
    %cst_9 = arith.constant 3.906250e-03 : f32
    %12 = vector.broadcast %cst_9 : f32 to vector<1x128xf32>
    %13 = arith.mulf %8, %12 : vector<1x128xf32>
    %cst_10 = arith.constant 3.906250e-03 : f32
    %14 = vector.broadcast %cst_10 : f32 to vector<1x128xf32>
    %15 = arith.mulf %11, %14 : vector<1x128xf32>
    %16 = arith.mulf %13, %13 : vector<1x128xf32>
    %17 = arith.subf %15, %16 : vector<1x128xf32>
    %cst_11 = arith.constant 0.000000e+00 : f32
    %18 = vector.broadcast %cst_11 : f32 to vector<1x128xf32>
    %19 = arith.maximumf %17, %18 : vector<1x128xf32>
    %20 = vector.extract_strided_slice %1 {offsets = [0, 0], sizes = [1, 128], strides = [1, 1]} : vector<5x128xf32> to vector<1x128xf32>
    %21 = vector.extract_strided_slice %1 {offsets = [1, 0], sizes = [1, 128], strides = [1, 1]} : vector<5x128xf32> to vector<1x128xf32>
    %cst_12 = arith.constant 9.99999974E-6 : f32
    %22 = vector.broadcast %cst_12 : f32 to vector<1x128xf32>
    %23 = arith.addf %19, %22 : vector<1x128xf32>
    %24 = math.rsqrt %23 : vector<1x128xf32>
    %25 = arith.mulf %20, %24 : vector<1x128xf32>
    %26 = arith.mulf %13, %25 : vector<1x128xf32>
    %27 = arith.subf %21, %26 : vector<1x128xf32>
    %28 = vector.broadcast %25 : vector<1x128xf32> to vector<256x128xf32>
    %29 = arith.mulf %6, %28 : vector<256x128xf32>
    %30 = vector.broadcast %27 : vector<1x128xf32> to vector<256x128xf32>
    %31 = arith.addf %29, %30 : vector<256x128xf32>
    %c1 = arith.constant 1 : index
    %c0_13 = arith.constant 0 : index
    %c0_14 = arith.constant 0 : index
    %32 = vector.load %arg1[%c1, %c0_13, %c0_14] : memref<3x128x128xf32, #tpu.memory_space<vmem>>, vector<1x128x128xf32>
    %33 = vector.shape_cast %32 : vector<1x128x128xf32> to vector<128x128xf32>
    %cst_15 = arith.constant dense<0.000000e+00> : vector<256x128xf32>
    %34 = tpu.matmul %31, %33, %cst_15 {dimension_numbers = #tpu.dot_dimension_numbers<[1], [0], [0], [1], [0, 0, 1, 1], [], []>} : vector<256x128xf32>, vector<128x128xf32>, vector<256x128xf32> -> vector<256x128xf32>
    %cst_16 = arith.constant 0.000000e+00 : f32
    %35 = vector.broadcast %cst_16 : f32 to vector<256x128xf32>
    %36 = arith.maximumf %34, %35 : vector<256x128xf32>
    %cst_17 = arith.constant dense<0.000000e+00> : vector<128xf32>
    %37 = vector.multi_reduction <add>, %36, %cst_17 [0] : vector<256x128xf32> to vector<128xf32>
    %38 = vector.shape_cast %37 : vector<128xf32> to vector<1x128xf32>
    %39 = arith.mulf %36, %36 : vector<256x128xf32>
    %cst_18 = arith.constant dense<0.000000e+00> : vector<128xf32>
    %40 = vector.multi_reduction <add>, %39, %cst_18 [0] : vector<256x128xf32> to vector<128xf32>
    %41 = vector.shape_cast %40 : vector<128xf32> to vector<1x128xf32>
    %cst_19 = arith.constant 3.906250e-03 : f32
    %42 = vector.broadcast %cst_19 : f32 to vector<1x128xf32>
    %43 = arith.mulf %38, %42 : vector<1x128xf32>
    %cst_20 = arith.constant 3.906250e-03 : f32
    %44 = vector.broadcast %cst_20 : f32 to vector<1x128xf32>
    %45 = arith.mulf %41, %44 : vector<1x128xf32>
    %46 = arith.mulf %43, %43 : vector<1x128xf32>
    %47 = arith.subf %45, %46 : vector<1x128xf32>
    %cst_21 = arith.constant 0.000000e+00 : f32
    %48 = vector.broadcast %cst_21 : f32 to vector<1x128xf32>
    %49 = arith.maximumf %47, %48 : vector<1x128xf32>
    %50 = vector.extract_strided_slice %1 {offsets = [2, 0], sizes = [1, 128], strides = [1, 1]} : vector<5x128xf32> to vector<1x128xf32>
    %51 = vector.extract_strided_slice %1 {offsets = [3, 0], sizes = [1, 128], strides = [1, 1]} : vector<5x128xf32> to vector<1x128xf32>
    %cst_22 = arith.constant 9.99999974E-6 : f32
    %52 = vector.broadcast %cst_22 : f32 to vector<1x128xf32>
    %53 = arith.addf %49, %52 : vector<1x128xf32>
    %54 = math.rsqrt %53 : vector<1x128xf32>
    %55 = arith.mulf %50, %54 : vector<1x128xf32>
    %56 = arith.mulf %43, %55 : vector<1x128xf32>
    %57 = arith.subf %51, %56 : vector<1x128xf32>
    %58 = vector.broadcast %55 : vector<1x128xf32> to vector<256x128xf32>
    %59 = arith.mulf %36, %58 : vector<256x128xf32>
    %60 = vector.broadcast %57 : vector<1x128xf32> to vector<256x128xf32>
    %61 = arith.addf %59, %60 : vector<256x128xf32>
    %c2 = arith.constant 2 : index
    %c0_23 = arith.constant 0 : index
    %c0_24 = arith.constant 0 : index
    %62 = vector.load %arg1[%c2, %c0_23, %c0_24] : memref<3x128x128xf32, #tpu.memory_space<vmem>>, vector<1x128x128xf32>
    %63 = vector.shape_cast %62 : vector<1x128x128xf32> to vector<128x128xf32>
    %64 = vector.extract_strided_slice %1 {offsets = [4, 0], sizes = [1, 128], strides = [1, 1]} : vector<5x128xf32> to vector<1x128xf32>
    %cst_25 = arith.constant dense<0.000000e+00> : vector<256x128xf32>
    %65 = tpu.matmul %61, %63, %cst_25 {dimension_numbers = #tpu.dot_dimension_numbers<[1], [0], [0], [1], [0, 0, 1, 1], [], []>} : vector<256x128xf32>, vector<128x128xf32>, vector<256x128xf32> -> vector<256x128xf32>
    %66 = vector.broadcast %64 : vector<1x128xf32> to vector<256x128xf32>
    %67 = arith.addf %65, %66 : vector<256x128xf32>
    %c0_26 = arith.constant 0 : index
    %c0_27 = arith.constant 0 : index
    %68 = vector.load %arg3[%c0_26, %c0_27] : memref<256x128xf32, #tpu.memory_space<vmem>>, vector<256x128xf32>
    tpu.vector_store %arg3[%c0_26, %c0_27], %67 {strides = array<i32>} : memref<256x128xf32, #tpu.memory_space<vmem>>, vector<256x128xf32>,
    return
  }
}

</mosaic_0001>

<bundles_post_ra>
// kernel: node_encoder_forward.1
= control target key start
LH: loop header
LB: loop body
LE: loop exit
PB: predicated region body
PF: predicated region fallthrough
CT: control target
= control target key end

     0   :  { %s2650_s0 = inlined_call_operand.vmem [shape: f32[256,128], index: 0, kind: input, shape index: {}]   ;;  %s2651_s1 = inlined_call_operand.vmem [shape: f32[3,128,128], index: 1, kind: input, shape index: {}]   ;;  %s2652_s2 = inlined_call_operand.vmem [shape: f32[5,128], index: 2, kind: input, shape index: {}]   ;;  %s2653_s3 = inlined_call_operand.hbm [shape: f32[256,128], index: 3, kind: output, shape index: {}]  }
   0x1   :  { %v48_v0 = vld [vmem:[%s2651_s1] sm:$0xff]  ;;  %v49_v1 = vld [vmem:[%s2651_s1 + $0x8] sm:$0xff]  ;;  %v50_v2 = vld [vmem:[%s2651_s1 + $0x10] sm:$0xff] }
   0x2   :  { %v1687_v3 = vpack.c.bf16 %v49_v1, %v48_v0  ;;  %v51_v4 = vld [vmem:[%s2651_s1 + $0x18] sm:$0xff]  ;;  %v52_v6 = vld [vmem:[%s2651_s1 + $0x20] sm:$0xff]  ;;  %v53_v7 = vld [vmem:[%s2651_s1 + $0x28] sm:$0xff] }
   0x3   :  { %v1691_v5 = vpack.c.bf16 %v51_v4, %v50_v2  ;;  %v1695_v8 = vpack.c.bf16 %v53_v7, %v52_v6  ;;  %v15_v9 = vld [vmem:[%s2650_s0] sm:$0xff]  ;;  %v54_v10 = vld [vmem:[%s2651_s1 + $0x30] sm:$0xff]  ;;  %v55_v11 = vld [vmem:[%s2651_s1 + $0x38] sm:$0xff] }
   0x4   :  { %1688 = vmatprep.subr.bf16.mxu0 %v1687_v3  ;;  %1783 = vmatprep.subr.bf16.mxu1 %v1687_v3  ;;  %v1699_v12 = vpack.c.bf16 %v55_v11, %v54_v10  ;;  %v56_v13 = vld [vmem:[%s2651_s1 + $0x40] sm:$0xff]  ;;  %v57_v14 = vld [vmem:[%s2651_s1 + $0x48] sm:$0xff]  ;;  %v58_v17 = vld [vmem:[%s2651_s1 + $0x50] sm:$0xff] }
   0x5   :  { %1690 = vmatpush3.bf16.msra.mxu0 %v1687_v3  ;;  %1791 = vmatpush3.bf16.msra.mxu1 %v1687_v3  ;;  %v31_v15 = vld [vmem:[%s2650_s0 + $0x80] sm:$0xff]  ;;  %v1703_v16 = vpack.c.bf16 %v57_v14, %v56_v13  ;;  %v59_v18 = vld [vmem:[%s2651_s1 + $0x58] sm:$0xff] }
   0x6   :  { %1692 = vmatprep.subr.bf16.mxu0 %v1691_v5  ;;  %1784 = vmatprep.subr.bf16.mxu1 %v1691_v5 }
   0x7   :  { %1479 = vmatprep.mubr.f32.mxu0 %v15_v9  ;;  %1503 = vmatprep.mubr.f32.mxu1 %v31_v15 }
   0x9   :  { %1694 = vmatpush3.bf16.msra.mxu0 %v1691_v5  ;;  %1792 = vmatpush3.bf16.msra.mxu1 %v1691_v5 }
   0xa   :  { %1696 = vmatprep.subr.bf16.mxu0 %v1695_v8  ;;  %1785 = vmatprep.subr.bf16.mxu1 %v1695_v8 }
   0xd   :  { %1698 = vmatpush3.bf16.msra.mxu0 %v1695_v8  ;;  %1793 = vmatpush3.bf16.msra.mxu1 %v1695_v8 }
   0xe   :  { %1700 = vmatprep.subr.bf16.mxu0 %v1699_v12  ;;  %1786 = vmatprep.subr.bf16.mxu1 %v1699_v12 }
  0x11   :  { %1702 = vmatpush3.bf16.msra.mxu0 %v1699_v12  ;;  %1794 = vmatpush3.bf16.msra.mxu1 %v1699_v12 }
  0x12   :  { %8 = vsyncpa [#allocation3], 0  ;;  %1704 = vmatprep.subr.bf16.mxu0 %v1703_v16  ;;  %v1707_v19 = vpack.c.bf16 %v59_v18, %v58_v17  ;;  %1787 = vmatprep.subr.bf16.mxu1 %v1703_v16  ;;  %v60_v20 = vld [vmem:[%s2651_s1 + $0x60] sm:$0xff]  ;;  %v61_v21 = vld [vmem:[%s2651_s1 + $0x68] sm:$0xff] }
  0x13   :  { %v1711_v22 = vpack.c.bf16 %v61_v21, %v60_v20  ;;  %v62_v23 = vld [vmem:[%s2651_s1 + $0x70] sm:$0xff]  ;;  %v63_v24 = vld [vmem:[%s2651_s1 + $0x78] sm:$0xff]  ;;  %v16_v26 = vld [vmem:[%s2650_s0 + $0x8] sm:$0xff] }
  0x14   :  { %v1715_v25 = vpack.c.bf16 %v63_v24, %v62_v23  ;;  %v32_v27 = vld [vmem:[%s2650_s0 + $0x88] sm:$0xff]  ;;  %v17_v28 = vld [vmem:[%s2650_s0 + $0x10] sm:$0xff]  ;;  %v18_v30 = vld [vmem:[%s2650_s0 + $0x18] sm:$0xff] }
  0x15   :  { %1706 = vmatpush3.bf16.msra.mxu0 %v1703_v16  ;;  %1795 = vmatpush3.bf16.msra.mxu1 %v1703_v16  ;;  %v33_v29 = vld [vmem:[%s2650_s0 + $0x90] sm:$0xff]  ;;  %v34_v31 = vld [vmem:[%s2650_s0 + $0x98] sm:$0xff]  ;;  %v19_v32 = vld [vmem:[%s2650_s0 + $0x20] sm:$0xff] }
  0x16   :  { %1708 = vmatprep.subr.bf16.mxu0 %v1707_v19  ;;  %1788 = vmatprep.subr.bf16.mxu1 %v1707_v19  ;;  %v35_v33 = vld [vmem:[%s2650_s0 + $0xa0] sm:$0xff]  ;;  %v20_v34 = vld [vmem:[%s2650_s0 + $0x28] sm:$0xff]  ;;  %v21_v36 = vld [vmem:[%s2650_s0 + $0x30] sm:$0xff] }
  0x17   :  { %v36_v35 = vld [vmem:[%s2650_s0 + $0xa8] sm:$0xff]  ;;  %v37_v37 = vld [vmem:[%s2650_s0 + $0xb0] sm:$0xff]  ;;  %v22_v38 = vld [vmem:[%s2650_s0 + $0x38] sm:$0xff] }
  0x18   :  { %v38_v39 = vld [vmem:[%s2650_s0 + $0xb8] sm:$0xff]  ;;  %v23_v40 = vld [vmem:[%s2650_s0 + $0x40] sm:$0xff]  ;;  %v24_v42 = vld [vmem:[%s2650_s0 + $0x48] sm:$0xff] }
  0x19   :  { %1710 = vmatpush3.bf16.msra.mxu0 %v1707_v19  ;;  %1796 = vmatpush3.bf16.msra.mxu1 %v1707_v19  ;;  %v39_v41 = vld [vmem:[%s2650_s0 + $0xc0] sm:$0xff]  ;;  %v40_v43 = vld [vmem:[%s2650_s0 + $0xc8] sm:$0xff]  ;;  %v25_v44 = vld [vmem:[%s2650_s0 + $0x50] sm:$0xff] }
  0x1a   :  { %1712 = vmatprep.subr.bf16.mxu0 %v1711_v22  ;;  %1789 = vmatprep.subr.bf16.mxu1 %v1711_v22  ;;  %v41_v45 = vld [vmem:[%s2650_s0 + $0xd0] sm:$0xff]  ;;  %v26_v46 = vld [vmem:[%s2650_s0 + $0x58] sm:$0xff]  ;;  %v27_v48 = vld [vmem:[%s2650_s0 + $0x60] sm:$0xff] }
  0x1b   :  { %v42_v47 = vld [vmem:[%s2650_s0 + $0xd8] sm:$0xff]  ;;  %v43_v49 = vld [vmem:[%s2650_s0 + $0xe0] sm:$0xff]  ;;  %v28_v50 = vld [vmem:[%s2650_s0 + $0x68] sm:$0xff] }
  0x1c   :  { %v44_v51 = vld [vmem:[%s2650_s0 + $0xe8] sm:$0xff]  ;;  %v29_v52 = vld [vmem:[%s2650_s0 + $0x70] sm:$0xff]  ;;  %v30_v54 = vld [vmem:[%s2650_s0 + $0x78] sm:$0xff] }
  0x1d   :  { %1714 = vmatpush3.bf16.msra.mxu0 %v1711_v22  ;;  %1797 = vmatpush3.bf16.msra.mxu1 %v1711_v22  ;;  %v45_v53 = vld [vmem:[%s2650_s0 + $0xf0] sm:$0xff]  ;;  %v46_v55 = vld [vmem:[%s2650_s0 + $0xf8] sm:$0xff]  ;;  %v1271_v56 = vld [vmem:[%s2651_s1 + $0x80] sm:$0xff] }
  0x1e   :  { %1716 = vmatprep.subr.bf16.mxu0 %v1715_v25  ;;  %1790 = vmatprep.subr.bf16.mxu1 %v1715_v25  ;;  %v1272_v57 = vld [vmem:[%s2651_s1 + $0x88] sm:$0xff]  ;;  %v1273_v59 = vld [vmem:[%s2651_s1 + $0x90] sm:$0xff]  ;;  %v1274_v60 = vld [vmem:[%s2651_s1 + $0x98] sm:$0xff] }
  0x1f   :  { %v1719_v58 = vpack.c.bf16 %v1272_v57, %v1271_v56  ;;  %v1723_v61 = vpack.c.bf16 %v1274_v60, %v1273_v59  ;;  %v1275_v62 = vld [vmem:[%s2651_s1 + $0xa0] sm:$0xff]  ;;  %v1276_v63 = vld [vmem:[%s2651_s1 + $0xa8] sm:$0xff]  ;;  %v1277_v1 = vld [vmem:[%s2651_s1 + $0xb0] sm:$0xff] }
  0x20   :  { %v1727_v0 = vpack.c.bf16 %v1276_v63, %v1275_v62  ;;  %v1278_v2 = vld [vmem:[%s2651_s1 + $0xb8] sm:$0xff]  ;;  %v1279_v4 = vld [vmem:[%s2651_s1 + $0xc0] sm:$0xff]  ;;  %v1280_v5 = vld [vmem:[%s2651_s1 + $0xc8] sm:$0xff] }
  0x21   :  { %1718 = vmatpush3.bf16.msra.mxu0 %v1715_v25  ;;  %1798 = vmatpush3.bf16.msra.mxu1 %v1715_v25  ;;  %v1731_v3 = vpack.c.bf16 %v1278_v2, %v1277_v1  ;;  %v1735_v6 = vpack.c.bf16 %v1280_v5, %v1279_v4  ;;  %v1281_v7 = vld [vmem:[%s2651_s1 + $0xd0] sm:$0xff]  ;;  %v1282_v8 = vld [vmem:[%s2651_s1 + $0xd8] sm:$0xff]  ;;  %v1283_v10 = vld [vmem:[%s2651_s1 + $0xe0] sm:$0xff] }
  0x22   :  { %1720 = vmatprep.subr.bf16.mxu1 %v1719_v58  ;;  %v1739_v9 = vpack.c.bf16 %v1282_v8, %v1281_v7  ;;  %v1284_v11 = vld [vmem:[%s2651_s1 + $0xe8] sm:$0xff]  ;;  %v1285_v13 = vld [vmem:[%s2651_s1 + $0xf0] sm:$0xff]  ;;  %v1286_v14 = vld [vmem:[%s2651_s1 + $0xf8] sm:$0xff] }
  0x23   :  { %v1743_v12 = vpack.c.bf16 %v1284_v11, %v1283_v10  ;;  %v1747_v15 = vpack.c.bf16 %v1286_v14, %v1285_v13 }
  0x24   :  { %1480 = vmatmul.mubr.f32.vlgmr.msra.gmra.mrb[0].mxu0 %v16_v26  ;;  %1504 = vmatmul.mubr.f32.vlgmr.msra.gmra.mrb[0].mxu1 %v32_v27 }
  0x25   :  { %1482 = vmatprep.mubr.f32.mxu0 %v17_v28  ;;  %1506 = vmatprep.mubr.f32.mxu1 %v33_v29 }
  0x26   :  { %1722 = vmatpush3.bf16.msra.mxu1 %v1719_v58 }
  0x27   :  { %1724 = vmatprep.subr.bf16.mxu1 %v1723_v61 }
  0x28   :  { %1483 = vmatmul.mubr.f32.gmra.mrb[2].mxu0 %v18_v30  ;;  %1507 = vmatmul.mubr.f32.gmra.mrb[2].mxu1 %v34_v31 }
  0x29   :  { %1485 = vmatprep.mubr.f32.mxu0 %v19_v32  ;;  %1509 = vmatprep.mubr.f32.mxu1 %v35_v33 }
  0x2a   :  { %1726 = vmatpush3.bf16.msra.mxu1 %v1723_v61 }
  0x2b   :  { %1728 = vmatprep.subr.bf16.mxu1 %v1727_v0 }
  0x2c   :  { %1486 = vmatmul.mubr.f32.gmra.mrb[4].mxu0 %v20_v34  ;;  %1510 = vmatmul.mubr.f32.gmra.mrb[4].mxu1 %v36_v35 }
  0x2d   :  { %1488 = vmatprep.mubr.f32.mxu0 %v21_v36  ;;  %1512 = vmatprep.mubr.f32.mxu1 %v37_v37 }
  0x2e   :  { %1730 = vmatpush3.bf16.msra.mxu1 %v1727_v0 }
  0x2f   :  { %1732 = vmatprep.subr.bf16.mxu1 %v1731_v3 }
  0x30   :  { %1489 = vmatmul.mubr.f32.gmra.mrb[6].mxu0 %v22_v38  ;;  %1513 = vmatmul.mubr.f32.gmra.mrb[6].mxu1 %v38_v39 }
  0x31   :  { %1491 = vmatprep.mubr.f32.mxu0 %v23_v40  ;;  %1515 = vmatprep.mubr.f32.mxu1 %v39_v41 }
  0x32   :  { %1734 = vmatpush3.bf16.msra.mxu1 %v1731_v3 }
  0x33   :  { %1736 = vmatprep.subr.bf16.mxu1 %v1735_v6 }
  0x34   :  { %1492 = vmatmul.mubr.f32.gmra.mrb[8].mxu0 %v24_v42  ;;  %1516 = vmatmul.mubr.f32.gmra.mrb[8].mxu1 %v40_v43 }
  0x35   :  { %1494 = vmatprep.mubr.f32.mxu0 %v25_v44  ;;  %1518 = vmatprep.mubr.f32.mxu1 %v41_v45 }
  0x36   :  { %1738 = vmatpush3.bf16.msra.mxu1 %v1735_v6 }
  0x37   :  { %1740 = vmatprep.subr.bf16.mxu1 %v1739_v9 }
  0x38   :  { %1495 = vmatmul.mubr.f32.gmra.mrb[10].mxu0 %v26_v46  ;;  %1519 = vmatmul.mubr.f32.gmra.mrb[10].mxu1 %v42_v47 }
  0x39   :  { %1497 = vmatprep.mubr.f32.mxu0 %v27_v48  ;;  %1521 = vmatprep.mubr.f32.mxu1 %v43_v49 }
  0x3a   :  { %1742 = vmatpush3.bf16.msra.mxu1 %v1739_v9 }
  0x3b   :  { %1744 = vmatprep.subr.bf16.mxu1 %v1743_v12 }
  0x3c   :  { %1498 = vmatmul.mubr.f32.gmra.mrb[12].mxu0 %v28_v50  ;;  %1522 = vmatmul.mubr.f32.gmra.mrb[12].mxu1 %v44_v51 }
  0x3d   :  { %1500 = vmatprep.mubr.f32.mxu0 %v29_v52  ;;  %1524 = vmatprep.mubr.f32.mxu1 %v45_v53 }
  0x3e   :  { %1746 = vmatpush3.bf16.msra.mxu1 %v1743_v12 }
  0x3f   :  { %1748 = vmatprep.subr.bf16.mxu1 %v1747_v15 }
  0x40   :  { %1501 = vmatmul.mubr.f32.gmra.mrb[14].mxu0 %v30_v54  ;;  %1525 = vmatmul.mubr.f32.gmra.mrb[14].mxu1 %v46_v55 }
  0x42   :  { %1750 = vmatpush3.bf16.msra.mxu1 %v1747_v15 }
  0xf7   :  { %v1481_v16 = vpop.f32.mrb[0].mxu0  ;;  %v2045_v17 = vpop.f32.mrb[0].mxu1 }
  0xf8   :  { %v2047_v18 = vmax.f32 %v1481_v16, 0.0  ;;  %v130_v19 = vpop.f32.mrb[1].mxu0  ;;  %v2049_v20 = vpop.f32.mrb[1].mxu1 }
  0xf9   :  { %v2051_v21 = vmax.f32 %v130_v19, 0.0 }
  0xfa   :  { %v359_v22 = vmul.f32 %v2047_v18, %v2047_v18 }
  0xfb   :  { %v358_v23 = vmul.f32 %v2051_v21, %v2051_v21  ;;  %v1484_v24 = vpop.f32.mrb[2].mxu0  ;;  %v2057_v25 = vpop.f32.mrb[2].mxu1  ;;  %v321_v28 = vadd.f32 %v2047_v18, %v2051_v21 }
  0xfc   :  { %v140_v26 = vpop.f32.mrb[3].mxu0  ;;  %v2059_v27 = vpop.f32.mrb[3].mxu1  ;;  %v2063_v29 = vmax.f32 %v1484_v24, 0.0 }
  0xfd   :  { %v2065_v30 = vmax.f32 %v140_v26, 0.0  ;;  %v390_v31 = vadd.f32 %v359_v22, %v358_v23 }
  0xfe   :  { %v361_v39 = vmul.f32 %v2063_v29, %v2063_v29 }
  0xff   :  { %v322_v32 = vadd.f32 %v321_v28, %v2065_v30  ;;  %v360_v33 = vmul.f32 %v2065_v30, %v2065_v30  ;;  %v1487_v34 = vpop.f32.mrb[4].mxu0  ;;  %v2070_v35 = vpop.f32.mrb[4].mxu1 }
 0x100   :  { %v2072_v36 = vmax.f32 %v1487_v34, 0.0  ;;  %v150_v37 = vpop.f32.mrb[5].mxu0  ;;  %v2074_v38 = vpop.f32.mrb[5].mxu1 }
 0x101   :  { %v391_v40 = vadd.f32 %v390_v31, %v360_v33  ;;  %v2078_v41 = vmax.f32 %v150_v37, 0.0  ;;  %v323_v42 = vadd.f32 %v322_v32, %v2063_v29 }
 0x102   :  { %v363_v48 = vmul.f32 %v2072_v36, %v2072_v36 }
 0x103   :  { %v324_v43 = vadd.f32 %v323_v42, %v2078_v41  ;;  %v362_v44 = vmul.f32 %v2078_v41, %v2078_v41  ;;  %v392_v45 = vadd.f32 %v391_v40, %v361_v39  ;;  %v1490_v46 = vpop.f32.mrb[6].mxu0  ;;  %v2084_v47 = vpop.f32.mrb[6].mxu1 }
 0x104   :  { %v160_v49 = vpop.f32.mrb[7].mxu0  ;;  %v2088_v50 = vpop.f32.mrb[7].mxu1  ;;  %v2090_v52 = vmax.f32 %v1490_v46, 0.0  ;;  %v2145_v46 = vmax.f32 %v2049_v20, 0.0 }
 0x105   :  { %v393_v51 = vadd.f32 %v392_v45, %v362_v44  ;;  %v2092_v53 = vmax.f32 %v160_v49, 0.0  ;;  %v325_v54 = vadd.f32 %v324_v43, %v2072_v36 }
 0x106   :  { %v365_v63 = vmul.f32 %v2090_v52, %v2090_v52  ;;  %v374_v20 = vmul.f32 %v2145_v46, %v2145_v46 }
 0x107   :  { %v326_v55 = vadd.f32 %v325_v54, %v2092_v53  ;;  %v364_v56 = vmul.f32 %v2092_v53, %v2092_v53  ;;  %v394_v57 = vadd.f32 %v393_v51, %v363_v48  ;;  %v1493_v58 = vpop.f32.mrb[8].mxu0  ;;  %v2098_v59 = vpop.f32.mrb[8].mxu1 }
 0x108   :  { %v2100_v60 = vmax.f32 %v1493_v58, 0.0  ;;  %v170_v61 = vpop.f32.mrb[9].mxu0  ;;  %v2102_v62 = vpop.f32.mrb[9].mxu1 }
 0x109   :  { %v395_v0 = vadd.f32 %v394_v57, %v364_v56  ;;  %v2106_v1 = vmax.f32 %v170_v61, 0.0  ;;  %v327_v2 = vadd.f32 %v326_v55, %v2090_v52  ;;  %v2156_v61 = vmax.f32 %v2045_v17, 0.0 }
 0x10a   :  { %v367_v8 = vmul.f32 %v2100_v60, %v2100_v60  ;;  %v2170_v17 = vmax.f32 %v2057_v25, 0.0 }
 0x10b   :  { %v328_v3 = vadd.f32 %v327_v2, %v2106_v1  ;;  %v366_v4 = vmul.f32 %v2106_v1, %v2106_v1  ;;  %v396_v5 = vadd.f32 %v395_v0, %v365_v63  ;;  %v1496_v6 = vpop.f32.mrb[10].mxu0  ;;  %v2112_v7 = vpop.f32.mrb[10].mxu1 }
 0x10c   :  { %v180_v9 = vpop.f32.mrb[11].mxu0  ;;  %v2116_v10 = vpop.f32.mrb[11].mxu1  ;;  %v2118_v12 = vmax.f32 %v1496_v6, 0.0  ;;  %v375_v6 = vmul.f32 %v2156_v61, %v2156_v61 }
 0x10d   :  { %v397_v11 = vadd.f32 %v396_v5, %v366_v4  ;;  %v2120_v13 = vmax.f32 %v180_v9, 0.0  ;;  %v329_v14 = vadd.f32 %v328_v3, %v2100_v60  ;;  %v2164_v3 = vmax.f32 %v2059_v27, 0.0 }
 0x10e   :  { %v369_v31 = vmul.f32 %v2118_v12, %v2118_v12 }
 0x10f   :  { %v330_v15 = vadd.f32 %v329_v14, %v2120_v13  ;;  %v368_v16 = vmul.f32 %v2120_v13, %v2120_v13  ;;  %v398_v19 = vadd.f32 %v397_v11, %v367_v8  ;;  %v1499_v22 = vpop.f32.mrb[12].mxu0  ;;  %v2126_v23 = vpop.f32.mrb[12].mxu1  ;;  %v376_v11 = vmul.f32 %v2164_v3, %v2164_v3 }
 0x110   :  { %v2128_v24 = vmax.f32 %v1499_v22, 0.0  ;;  %v190_v26 = vpop.f32.mrb[13].mxu0  ;;  %v2130_v28 = vpop.f32.mrb[13].mxu1  ;;  %v2176_v14 = vmax.f32 %v2074_v38, 0.0 }
 0x111   :  { %v399_v32 = vadd.f32 %v398_v19, %v368_v16  ;;  %v2134_v33 = vmax.f32 %v190_v26, 0.0  ;;  %v331_v34 = vadd.f32 %v330_v15, %v2118_v12  ;;  %v377_v16 = vmul.f32 %v2170_v17, %v2170_v17 }
 0x112   :  { %v371_v44 = vmul.f32 %v2128_v24, %v2128_v24  ;;  %v2182_v19 = vmax.f32 %v2070_v35, 0.0  ;;  %v378_v26 = vmul.f32 %v2176_v14, %v2176_v14 }
 0x113   :  { %v332_v37 = vadd.f32 %v331_v34, %v2134_v33  ;;  %v370_v39 = vmul.f32 %v2134_v33, %v2134_v33  ;;  %v400_v40 = vadd.f32 %v399_v32, %v369_v31  ;;  %v1502_v42 = vpop.f32.mrb[14].mxu0  ;;  %v2140_v43 = vpop.f32.mrb[14].mxu1  ;;  %v2188_v31 = vmax.f32 %v2088_v50, 0.0 }
 0x114   :  { %v200_v45 = vpop.f32.mrb[15].mxu0  ;;  %v280_v48 = vpop.f32.mrb[15].mxu1  ;;  %v2147_v51 = vmax.f32 %v1502_v42, 0.0  ;;  %v379_v34 = vmul.f32 %v2182_v19, %v2182_v19  ;;  %v2200_v42 = vmax.f32 %v2102_v62, 0.0 }
 0x115   :  { %v401_v49 = vadd.f32 %v400_v40, %v370_v39  ;;  %v2149_v54 = vmax.f32 %v200_v45, 0.0  ;;  %v333_v55 = vadd.f32 %v332_v37, %v2128_v24  ;;  %v2194_v37 = vmax.f32 %v2084_v47, 0.0 }
 0x116   :  { %v373_v63 = vmul.f32 %v2147_v51, %v2147_v51  ;;  %v380_v40 = vmul.f32 %v2188_v31, %v2188_v31 }
 0x117   :  { %v334_v56 = vadd.f32 %v333_v55, %v2149_v54  ;;  %v372_v57 = vmul.f32 %v2149_v54, %v2149_v54  ;;  %v402_v58 = vadd.f32 %v401_v49, %v371_v44  ;;  %v381_v45 = vmul.f32 %v2194_v37, %v2194_v37 }
 0x118   :  { %v2206_v49 = vmax.f32 %v2098_v59, 0.0 }
 0x119   :  { %v403_v0 = vadd.f32 %v402_v58, %v372_v57  ;;  %v335_v2 = vadd.f32 %v334_v56, %v2147_v51  ;;  %v382_v56 = vmul.f32 %v2200_v42, %v2200_v42  ;;  %v2212_v57 = vmax.f32 %v2116_v10, 0.0 }
 0x11b   :  { %v336_v4 = vadd.f32 %v335_v2, %v2145_v46  ;;  %v404_v5 = vadd.f32 %v403_v0, %v373_v63  ;;  %v2218_v63 = vmax.f32 %v2112_v7, 0.0  ;;  %v384_v2 = vmul.f32 %v2212_v57, %v2212_v57 }
 0x11d   :  { %v405_v8 = vadd.f32 %v404_v5, %v374_v20  ;;  %v337_v9 = vadd.f32 %v336_v4, %v2156_v61  ;;  %v383_v20 = vmul.f32 %v2206_v49, %v2206_v49  ;;  %v2224_v4 = vmax.f32 %v2130_v28, 0.0 }
 0x11f   :  { %v338_v27 = vadd.f32 %v337_v9, %v2164_v3  ;;  %v406_v15 = vadd.f32 %v405_v8, %v375_v6  ;;  %v385_v6 = vmul.f32 %v2218_v63, %v2218_v63  ;;  %v2230_v8 = vmax.f32 %v2126_v23, 0.0 }
 0x121   :  { %v407_v25 = vadd.f32 %v406_v15, %v376_v11  ;;  %v339_v22 = vadd.f32 %v338_v27, %v2170_v17  ;;  %v386_v11 = vmul.f32 %v2224_v4, %v2224_v4  ;;  %v2235_v27 = vmax.f32 %v280_v48, 0.0 }
 0x123   :  { %v340_v38 = vadd.f32 %v339_v22, %v2176_v14  ;;  %v408_v32 = vadd.f32 %v407_v25, %v377_v16  ;;  %v387_v16 = vmul.f32 %v2230_v8, %v2230_v8  ;;  %v2241_v22 = vmax.f32 %v2140_v43, 0.0 }
 0x125   :  { %v409_v35 = vadd.f32 %v408_v32, %v378_v26  ;;  %v341_v39 = vadd.f32 %v340_v38, %v2182_v19  ;;  %v388_v26 = vmul.f32 %v2235_v27, %v2235_v27  ;;  %v389_v48 = vmul.f32 %v2241_v22, %v2241_v22 }
 0x127   :  { %v342_v50 = vadd.f32 %v341_v39, %v2188_v31  ;;  %v410_v44 = vadd.f32 %v409_v35, %v379_v34 }
 0x129   :  { %v411_v47 = vadd.f32 %v410_v44, %v380_v40  ;;  %v343_v55 = vadd.f32 %v342_v50, %v2194_v37 }
 0x12b   :  { %v344_v62 = vadd.f32 %v343_v55, %v2200_v42  ;;  %v412_v58 = vadd.f32 %v411_v47, %v381_v45 }
 0x12d   :  { %v413_v59 = vadd.f32 %v412_v58, %v382_v56  ;;  %v345_v0 = vadd.f32 %v344_v62, %v2206_v49 }
 0x12f   :  { %v346_v10 = vadd.f32 %v345_v0, %v2212_v57  ;;  %v414_v5 = vadd.f32 %v413_v59, %v383_v20 }
 0x131   :  { %v415_v7 = vadd.f32 %v414_v5, %v384_v2  ;;  %v347_v9 = vadd.f32 %v346_v10, %v2218_v63 }
 0x133   :  { %v348_v28 = vadd.f32 %v347_v9, %v2224_v4  ;;  %v416_v15 = vadd.f32 %v415_v7, %v385_v6  ;;  %v440_v9 = vlaneseq }
 0x135   :  { %v417_v25 = vadd.f32 %v416_v15, %v386_v11  ;;  %v349_v23 = vadd.f32 %v348_v28, %v2230_v8  ;;  %v2253_v11 = vld [vmem:[%s2652_s2] sm:$0x1f]  ;;  %v2255_v28 = vshrl.u32 %v440_v9, 7 }
 0x137   :  { %v350_v38 = vadd.f32 %v349_v23, %v2235_v27  ;;  %v418_v32 = vadd.f32 %v417_v25, %v387_v16  ;;  %v442_v23 = vsub.s32 0, %v2255_v28 }
 0x139   :  { %v351_v34 = vadd.f32 %v350_v38, %v2241_v22  ;;  %v419_v35 = vadd.f32 %v418_v32, %v388_v26  ;;  %v478_v38 = vsub.s32 1, %v2255_v28 }
 0x13b   :  { %v352_v39 = vrot.slane %v351_v34, 4  ;;  %v420_v40 = vadd.f32 %v419_v35, %v389_v48 }
 0x13d   :  { %v353_v50 = vadd.f32 %v352_v39, %v351_v34  ;;  %v421_v44 = vrot.slane %v420_v40, 4 }
 0x13f   :  { %v354_v43 = vrot.slane %v353_v50, 2  ;;  %v422_v45 = vadd.f32 %v421_v44, %v420_v40 }
 0x141   :  { %v355_v47 = vadd.f32 %v354_v43, %v353_v50  ;;  %v423_v55 = vrot.slane %v422_v45, 2 }
 0x143   :  { %v356_v56 = vrot.slane %v355_v47, 1  ;;  %v424_v62 = vadd.f32 %v423_v55, %v422_v45 }
 0x145   :  { %v357_v58 = vadd.f32 %v356_v56, %v355_v47  ;;  %v425_v20 = vrot.slane %v424_v62, 1 }
 0x147   :  { %v426_v59 = vadd.f32 %v425_v20, %v424_v62  ;;  %v427_v0 = vmul.f32 0.00390625, %v357_v58 }
 0x149   :  { %v428_v2 = vmul.f32 0.00390625, %v426_v59  ;;  %v429_v10 = vmul.f32 %v427_v0, %v427_v0 }
 0x14b   :  { %v430_v5 = vsub.f32 %v428_v2, %v429_v10 }
 0x14d   :  { %v431_v6 = vmax.f32 %v430_v5, 0.0 }
 0x14f   :  { %v432_v7 = vadd.f32 1e-05, %v431_v6 }
 0x151   :  { %1802 = vrsqrt.f32 %v432_v7 }
 0x15b   :  { %v1803_v15 = vpop.eup %1802 }
 0x15c   :  { %v434_v16 = vmul.f32 %v1803_v15, %v2253_v11 }
 0x15e   :  { %v435_v25 = vmul.f32 %v434_v16, %v427_v0  ;;  %v2261_v48 = vrot.slane %v434_v16, %v442_v23 }
 0x160   :  { %v437_v26 = vrot.slane %v435_v25, 7  ;;  %v445_v35 = vmul.f32 %v2261_v48, %v2047_v18  ;;  %v444_v39 = vmul.f32 %v2261_v48, %v2051_v21  ;;  %v446_v50 = vmul.f32 %v2261_v48, %v2065_v30 }
 0x161   :  { %v447_v45 = vmul.f32 %v2261_v48, %v2063_v29  ;;  %v448_v18 = vmul.f32 %v2261_v48, %v2078_v41  ;;  %v449_v30 = vmul.f32 %v2261_v48, %v2072_v36  ;;  %v450_v55 = vmul.f32 %v2261_v48, %v2092_v53 }
 0x162   :  { %v439_v32 = vsub.f32 %v2253_v11, %v437_v26  ;;  %v451_v41 = vmul.f32 %v2261_v48, %v2090_v52  ;;  %v452_v62 = vmul.f32 %v2261_v48, %v2106_v1  ;;  %v453_v53 = vmul.f32 %v2261_v48, %v2100_v60 }
 0x163   :  { %v454_v20 = vmul.f32 %v2261_v48, %v2120_v13  ;;  %v455_v1 = vmul.f32 %v2261_v48, %v2118_v12  ;;  %v456_v0 = vmul.f32 %v2261_v48, %v2134_v33  ;;  %v457_v13 = vmul.f32 %v2261_v48, %v2128_v24 }
 0x164   :  { %v2263_v34 = vrot.slane %v439_v32, %v478_v38  ;;  %v458_v10 = vmul.f32 %v2261_v48, %v2149_v54  ;;  %v459_v33 = vmul.f32 %v2261_v48, %v2147_v51  ;;  %v460_v6 = vmul.f32 %v2261_v48, %v2145_v46 }
 0x165   :  { %v461_v54 = vmul.f32 %v2261_v48, %v2156_v61  ;;  %v462_v9 = vmul.f32 %v2261_v48, %v2164_v3  ;;  %v463_v46 = vmul.f32 %v2261_v48, %v2170_v17  ;;  %v464_v16 = vmul.f32 %v2261_v48, %v2176_v14 }
 0x166   :  { %v481_v40 = vadd.f32 %v2263_v34, %v445_v35  ;;  %v480_v44 = vadd.f32 %v2263_v34, %v444_v39  ;;  %v482_v43 = vadd.f32 %v2263_v34, %v446_v50  ;;  %v483_v21 = vadd.f32 %v2263_v34, %v447_v45 }
 0x167   :  { %v484_v47 = vadd.f32 %v2263_v34, %v448_v18  ;;  %v485_v56 = vadd.f32 %v2263_v34, %v449_v30  ;;  %v486_v29 = vadd.f32 %v2263_v34, %v450_v55  ;;  %v487_v58 = vadd.f32 %v2263_v34, %v451_v41  ;;  %v1293_v55 = vld [vmem:[%s2651_s1 + $0x130] sm:$0xff]  ;;  %v1295_v41 = vld [vmem:[%s2651_s1 + $0x140] sm:$0xff] }
 0x168   :  { %1559 = vmatprep.mubr.f32.mxu1 %v480_v44  ;;  %v488_v36 = vadd.f32 %v2263_v34, %v452_v62  ;;  %v489_v59 = vadd.f32 %v2263_v34, %v453_v53  ;;  %v490_v52 = vadd.f32 %v2263_v34, %v454_v20  ;;  %v491_v2 = vadd.f32 %v2263_v34, %v455_v1  ;;  %v1296_v62 = vld [vmem:[%s2651_s1 + $0x148] sm:$0xff]  ;;  %v1298_v53 = vld [vmem:[%s2651_s1 + $0x158] sm:$0xff] }
 0x169   :  { %1560 = vmatmul.mubr.f32.vlgmr.msra.gmra.mrb[16].mxu1 %v481_v40  ;;  %v492_v60 = vadd.f32 %v2263_v34, %v456_v0  ;;  %v493_v5 = vadd.f32 %v2263_v34, %v457_v13  ;;  %v494_v12 = vadd.f32 %v2263_v34, %v458_v10  ;;  %v495_v7 = vadd.f32 %v2263_v34, %v459_v33  ;;  %v1301_v0 = vld [vmem:[%s2651_s1 + $0x170] sm:$0xff] }
 0x16a   :  { %1562 = vmatprep.mubr.f32.mxu1 %v482_v43  ;;  %v496_v24 = vadd.f32 %v2263_v34, %v460_v6  ;;  %v497_v15 = vadd.f32 %v2263_v34, %v461_v54  ;;  %v498_v51 = vadd.f32 %v2263_v34, %v462_v9  ;;  %v499_v25 = vadd.f32 %v2263_v34, %v463_v46 }
 0x16b   :  { %v500_v61 = vadd.f32 %v2263_v34, %v464_v16  ;;  %v465_v3 = vmul.f32 %v2261_v48, %v2182_v19  ;;  %v466_v23 = vmul.f32 %v2261_v48, %v2188_v31  ;;  %v467_v14 = vmul.f32 %v2261_v48, %v2194_v37 }
 0x16c   :  { %v468_v38 = vmul.f32 %v2261_v48, %v2200_v42  ;;  %v469_v31 = vmul.f32 %v2261_v48, %v2206_v49  ;;  %v470_v35 = vmul.f32 %v2261_v48, %v2212_v57  ;;  %v471_v42 = vmul.f32 %v2261_v48, %v2218_v63 }
 0x16d   :  { %1563 = vmatmul.mubr.f32.gmra.mrb[18].mxu1 %v483_v21  ;;  %v501_v26 = vadd.f32 %v2263_v34, %v465_v3  ;;  %v502_v17 = vadd.f32 %v2263_v34, %v466_v23  ;;  %v503_v32 = vadd.f32 %v2263_v34, %v467_v14  ;;  %v472_v40 = vmul.f32 %v2261_v48, %v2224_v4  ;;  %v1291_v21 = vld [vmem:[%s2651_s1 + $0x120] sm:$0xff] }
 0x16e   :  { %1565 = vmatprep.mubr.f32.mxu1 %v484_v47  ;;  %v504_v19 = vadd.f32 %v2263_v34, %v468_v38  ;;  %v505_v39 = vadd.f32 %v2263_v34, %v469_v31  ;;  %v506_v37 = vadd.f32 %v2263_v34, %v470_v35  ;;  %v507_v50 = vadd.f32 %v2263_v34, %v471_v42  ;;  %v1292_v47 = vld [vmem:[%s2651_s1 + $0x128] sm:$0xff] }
 0x16f   :  { %v508_v49 = vadd.f32 %v2263_v34, %v472_v40  ;;  %v473_v57 = vmul.f32 %v2261_v48, %v2230_v8  ;;  %v474_v44 = vmul.f32 %v2261_v48, %v2235_v27  ;;  %v475_v4 = vmul.f32 %v2261_v48, %v2241_v22  ;;  %v1287_v8 = vld [vmem:[%s2651_s1 + $0x100] sm:$0xff]  ;;  %v1288_v27 = vld [vmem:[%s2651_s1 + $0x108] sm:$0xff]  ;;  %v1289_v22 = vld [vmem:[%s2651_s1 + $0x110] sm:$0xff] }
 0x170   :  { %v1751_v18 = vpack.c.bf16 %v1288_v27, %v1287_v8  ;;  %v1290_v48 = vld [vmem:[%s2651_s1 + $0x118] sm:$0xff]  ;;  %v1759_v30 = vpack.c.bf16 %v1292_v47, %v1291_v21 }
 0x171   :  { %1566 = vmatmul.mubr.f32.gmra.mrb[20].mxu1 %v485_v56  ;;  %v509_v43 = vadd.f32 %v2263_v34, %v473_v57  ;;  %v510_v63 = vadd.f32 %v2263_v34, %v474_v44  ;;  %v511_v45 = vadd.f32 %v2263_v34, %v475_v4  ;;  %v1755_v34 = vpack.c.bf16 %v1290_v48, %v1289_v22  ;;  %v1294_v56 = vld [vmem:[%s2651_s1 + $0x138] sm:$0xff] }
 0x172   :  { %1568 = vmatprep.mubr.f32.mxu1 %v486_v29  ;;  %1752 = vmatprep.subr.bf16.mxu0 %v1751_v18  ;;  %v1763_v29 = vpack.c.bf16 %v1294_v56, %v1293_v55 }
 0x173   :  { %1754 = vmatpush3.bf16.msra.mxu0 %v1751_v18 }
 0x174   :  { %1756 = vmatprep.subr.bf16.mxu0 %v1755_v34 }
 0x175   :  { %1569 = vmatmul.mubr.f32.gmra.mrb[22].mxu1 %v487_v58  ;;  %v1767_v58 = vpack.c.bf16 %v1296_v62, %v1295_v41 }
 0x176   :  { %1571 = vmatprep.mubr.f32.mxu1 %v488_v36  ;;  %v1297_v36 = vld [vmem:[%s2651_s1 + $0x150] sm:$0xff] }
 0x177   :  { %1758 = vmatpush3.bf16.msra.mxu0 %v1755_v34  ;;  %v1771_v20 = vpack.c.bf16 %v1298_v53, %v1297_v36 }
 0x178   :  { %1760 = vmatprep.subr.bf16.mxu0 %v1759_v30 }
 0x179   :  { %1572 = vmatmul.mubr.f32.gmra.mrb[24].mxu1 %v489_v59  ;;  %v1299_v59 = vld [vmem:[%s2651_s1 + $0x160] sm:$0xff] }
 0x17a   :  { %1574 = vmatprep.mubr.f32.mxu1 %v490_v52  ;;  %v1300_v52 = vld [vmem:[%s2651_s1 + $0x168] sm:$0xff] }
 0x17b   :  { %1762 = vmatpush3.bf16.msra.mxu0 %v1759_v30  ;;  %v1775_v1 = vpack.c.bf16 %v1300_v52, %v1299_v59 }
 0x17c   :  { %1764 = vmatprep.subr.bf16.mxu0 %v1763_v29 }
 0x17d   :  { %1575 = vmatmul.mubr.f32.gmra.mrb[26].mxu1 %v491_v2  ;;  %v1302_v2 = vld [vmem:[%s2651_s1 + $0x178] sm:$0xff]  ;;  %s1830_s1 = smov [#allocation2]  }
 0x17e   :  { %1577 = vmatprep.mubr.f32.mxu1 %v492_v60  ;;  %v1779_v60 = vpack.c.bf16 %v1302_v2, %v1301_v0  ;;  %s1260_s0 = sshll.u32 %s1830_s1, 4  ;;  %s1261_s0 = int_to_ptr.vmem [resolvable:$true] %s1260_s0 }
 0x17f   :  { %1766 = vmatpush3.bf16.msra.mxu0 %v1763_v29  ;;  %s1806_s8 = scalar_lea.vmem %s1261_s0, 4096  ;;  %p1811_p1 = scmp.lt.s32.totalorder %s1261_s0, %s1261_s0 }
 0x180   :  { %1768 = vmatprep.subr.bf16.mxu0 %v1767_v58  ;;  %p1807_p0 = scmp.ne.s32.totalorder %s1261_s0, %s1806_s8  ;;  %p1812_p2 = scmp.lt.s32.totalorder %s1806_s8, %s1806_s8 }
 0x181   :  { %1578 = vmatmul.mubr.f32.gmra.mrb[28].mxu1 %v493_v5 }
 0x182   :  { %1580 = vmatprep.mubr.f32.mxu1 %v494_v12  ;;  %p1813_p3 = por %p1812_p2, %p1811_p1 }
 0x183   :  { %1770 = vmatpush3.bf16.msra.mxu0 %v1767_v58 }
 0x184   :  { %1772 = vmatprep.subr.bf16.mxu0 %v1771_v20  ;;  %p1814_p4 = pnand %p1813_p3, %p1807_p0 }
 0x185   :  { %1581 = vmatmul.mubr.f32.gmra.mrb[30].mxu1 %v495_v7 }
 0x186   :  { %1583 = vmatprep.mubr.f32.mxu1 %v496_v24 }
 0x187   :  { %1774 = vmatpush3.bf16.msra.mxu0 %v1771_v20 }
 0x188   :  { %1776 = vmatprep.subr.bf16.mxu0 %v1775_v1 }
 0x189   :  { %1584 = vmatmul.mubr.f32.gmra.mrb[32].mxu1 %v497_v15 }
 0x18a   :  { %1586 = vmatprep.mubr.f32.mxu1 %v498_v51 }
 0x18b   :  { %1778 = vmatpush3.bf16.msra.mxu0 %v1775_v1 }
 0x18c   :  { %1780 = vmatprep.subr.bf16.mxu0 %v1779_v60 }
 0x18d   :  { %1587 = vmatmul.mubr.f32.gmra.mrb[34].mxu1 %v499_v25 }
 0x18e   :  { %1589 = vmatprep.mubr.f32.mxu1 %v500_v61 }
 0x18f   :  { %1782 = vmatpush3.bf16.msra.mxu0 %v1779_v60 }
 0x191   :  { %1590 = vmatmul.mubr.f32.gmra.mrb[36].mxu1 %v501_v26 }
 0x192   :  { %1592 = vmatprep.mubr.f32.mxu1 %v502_v17 }
 0x195   :  { %1593 = vmatmul.mubr.f32.gmra.mrb[38].mxu1 %v503_v32 }
 0x196   :  { %1595 = vmatprep.mubr.f32.mxu1 %v504_v19 }
 0x199   :  { %1596 = vmatmul.mubr.f32.gmra.mrb[40].mxu1 %v505_v39 }
 0x19a   :  { %1598 = vmatprep.mubr.f32.mxu1 %v506_v37 }
 0x19d   :  { %1599 = vmatmul.mubr.f32.gmra.mrb[42].mxu1 %v507_v50 }
 0x19e   :  { %1601 = vmatprep.mubr.f32.mxu1 %v508_v49 }
 0x1a1   :  { %1602 = vmatmul.mubr.f32.gmra.mrb[44].mxu1 %v509_v43 }
 0x1a2   :  { %1604 = vmatprep.mubr.f32.mxu1 %v510_v63 }
 0x1a5   :  { %1605 = vmatmul.mubr.f32.gmra.mrb[46].mxu1 %v511_v45 }
 0x23c   :  { %v1561_v13 = vpop.f32.mrb[16].mxu1 }
 0x23d   :  { %v2409_v10 = vmax.f32 %v1561_v13, 0.0  ;;  %v595_v5 = vpop.f32.mrb[17].mxu1 }
 0x23e   :  { %v2411_v12 = vmax.f32 %v595_v5, 0.0 }
 0x23f   :  { %v824_v33 = vmul.f32 %v2409_v10, %v2409_v10 }
 0x240   :  { %v823_v6 = vmul.f32 %v2411_v12, %v2411_v12  ;;  %v1564_v7 = vpop.f32.mrb[18].mxu1  ;;  %v786_v54 = vadd.f32 %v2409_v10, %v2411_v12 }
 0x241   :  { %v605_v24 = vpop.f32.mrb[19].mxu1  ;;  %v2419_v9 = vmax.f32 %v1564_v7, 0.0 }
 0x242   :  { %v2421_v15 = vmax.f32 %v605_v24, 0.0  ;;  %v855_v51 = vadd.f32 %v824_v33, %v823_v6 }
 0x243   :  { %v826_v23 = vmul.f32 %v2419_v9, %v2419_v9 }
 0x244   :  { %v787_v46 = vadd.f32 %v786_v54, %v2421_v15  ;;  %v825_v16 = vmul.f32 %v2421_v15, %v2421_v15  ;;  %v1567_v25 = vpop.f32.mrb[20].mxu1 }
 0x245   :  { %v2426_v61 = vmax.f32 %v1567_v25, 0.0  ;;  %v615_v3 = vpop.f32.mrb[21].mxu1 }
 0x246   :  { %v856_v26 = vadd.f32 %v855_v51, %v825_v16  ;;  %v2430_v17 = vmax.f32 %v615_v3, 0.0  ;;  %v788_v14 = vadd.f32 %v787_v46, %v2419_v9 }
 0x247   :  { %v828_v35 = vmul.f32 %v2426_v61, %v2426_v61 }
 0x248   :  { %v789_v38 = vadd.f32 %v788_v14, %v2430_v17  ;;  %v827_v32 = vmul.f32 %v2430_v17, %v2430_v17  ;;  %v857_v19 = vadd.f32 %v856_v26, %v826_v23  ;;  %v1570_v31 = vpop.f32.mrb[22].mxu1 }
 0x249   :  { %v625_v39 = vpop.f32.mrb[23].mxu1  ;;  %v2438_v42 = vmax.f32 %v1570_v31, 0.0 }
 0x24a   :  { %v858_v37 = vadd.f32 %v857_v19, %v827_v32  ;;  %v2440_v40 = vmax.f32 %v625_v39, 0.0  ;;  %v790_v50 = vadd.f32 %v789_v38, %v2426_v61 }
 0x24b   :  { %v830_v45 = vmul.f32 %v2438_v42, %v2438_v42 }
 0x24c   :  { %v791_v49 = vadd.f32 %v790_v50, %v2440_v40  ;;  %v829_v57 = vmul.f32 %v2440_v40, %v2440_v40  ;;  %v859_v44 = vadd.f32 %v858_v37, %v828_v35  ;;  %v1573_v43 = vpop.f32.mrb[24].mxu1 }
 0x24d   :  { %v2446_v63 = vmax.f32 %v1573_v43, 0.0  ;;  %v635_v4 = vpop.f32.mrb[25].mxu1 }
 0x24e   :  { %v860_v8 = vadd.f32 %v859_v44, %v829_v57  ;;  %v2450_v27 = vmax.f32 %v635_v4, 0.0  ;;  %v792_v18 = vadd.f32 %v791_v49, %v2438_v42 }
 0x24f   :  { %v832_v47 = vmul.f32 %v2446_v63, %v2446_v63 }
 0x250   :  { %v793_v22 = vadd.f32 %v792_v18, %v2450_v27  ;;  %v831_v48 = vmul.f32 %v2450_v27, %v2450_v27  ;;  %v861_v34 = vadd.f32 %v860_v8, %v830_v45  ;;  %v1576_v21 = vpop.f32.mrb[26].mxu1 }
 0x251   :  { %v645_v30 = vpop.f32.mrb[27].mxu1  ;;  %v2458_v56 = vmax.f32 %v1576_v21, 0.0 }
 0x252   :  { %v862_v55 = vadd.f32 %v861_v34, %v831_v48  ;;  %v2460_v29 = vmax.f32 %v645_v30, 0.0  ;;  %v794_v41 = vadd.f32 %v793_v22, %v2446_v63 }
 0x253   :  { %v834_v52 = vmul.f32 %v2458_v56, %v2458_v56 }
 0x254   :  { %v795_v62 = vadd.f32 %v794_v41, %v2460_v29  ;;  %v833_v58 = vmul.f32 %v2460_v29, %v2460_v29  ;;  %v863_v36 = vadd.f32 %v862_v55, %v832_v47  ;;  %v1579_v53 = vpop.f32.mrb[28].mxu1 }
 0x255   :  { %v2466_v20 = vmax.f32 %v1579_v53, 0.0  ;;  %v655_v59 = vpop.f32.mrb[29].mxu1 }
 0x256   :  { %v864_v1 = vadd.f32 %v863_v36, %v833_v58  ;;  %v2470_v0 = vmax.f32 %v655_v59, 0.0  ;;  %v796_v2 = vadd.f32 %v795_v62, %v2458_v56 }
 0x257   :  { %v836_v6 = vmul.f32 %v2466_v20, %v2466_v20 }
 0x258   :  { %v797_v60 = vadd.f32 %v796_v2, %v2470_v0  ;;  %v835_v13 = vmul.f32 %v2470_v0, %v2470_v0  ;;  %v865_v5 = vadd.f32 %v864_v1, %v834_v52  ;;  %v1582_v33 = vpop.f32.mrb[30].mxu1 }
 0x259   :  { %v665_v7 = vpop.f32.mrb[31].mxu1  ;;  %v2478_v54 = vmax.f32 %v1582_v33, 0.0 }
 0x25a   :  { %v866_v24 = vadd.f32 %v865_v5, %v835_v13  ;;  %v2480_v51 = vmax.f32 %v665_v7, 0.0  ;;  %v798_v46 = vadd.f32 %v797_v60, %v2466_v20 }
 0x25b   :  { %v838_v38 = vmul.f32 %v2478_v54, %v2478_v54 }
 0x25c   :  { %v799_v16 = vadd.f32 %v798_v46, %v2480_v51  ;;  %v837_v25 = vmul.f32 %v2480_v51, %v2480_v51  ;;  %v867_v3 = vadd.f32 %v866_v24, %v836_v6  ;;  %v1585_v23 = vpop.f32.mrb[32].mxu1 }
 0x25d   :  { %v2486_v26 = vmax.f32 %v1585_v23, 0.0  ;;  %v675_v14 = vpop.f32.mrb[33].mxu1 }
 0x25e   :  { %v868_v32 = vadd.f32 %v867_v3, %v837_v25  ;;  %v2490_v19 = vmax.f32 %v675_v14, 0.0  ;;  %v800_v31 = vadd.f32 %v799_v16, %v2478_v54 }
 0x25f   :  { %v840_v49 = vmul.f32 %v2486_v26, %v2486_v26 }
 0x260   :  { %v801_v35 = vadd.f32 %v800_v31, %v2490_v19  ;;  %v839_v39 = vmul.f32 %v2490_v19, %v2490_v19  ;;  %v869_v37 = vadd.f32 %v868_v32, %v838_v38  ;;  %v1588_v50 = vpop.f32.mrb[34].mxu1 }
 0x261   :  { %v685_v57 = vpop.f32.mrb[35].mxu1  ;;  %v2498_v43 = vmax.f32 %v1588_v50, 0.0 }
 0x262   :  { %v870_v44 = vadd.f32 %v869_v37, %v839_v39  ;;  %v2500_v4 = vmax.f32 %v685_v57, 0.0  ;;  %v802_v45 = vadd.f32 %v801_v35, %v2486_v26 }
 0x263   :  { %v842_v47 = vmul.f32 %v2498_v43, %v2498_v43 }
 0x264   :  { %v803_v8 = vadd.f32 %v802_v45, %v2500_v4  ;;  %v841_v18 = vmul.f32 %v2500_v4, %v2500_v4  ;;  %v871_v22 = vadd.f32 %v870_v44, %v840_v49  ;;  %v1591_v48 = vpop.f32.mrb[36].mxu1 }
 0x265   :  { %v2506_v34 = vmax.f32 %v1591_v48, 0.0  ;;  %v695_v21 = vpop.f32.mrb[37].mxu1 }
 0x266   :  { %v872_v30 = vadd.f32 %v871_v22, %v841_v18  ;;  %v2510_v55 = vmax.f32 %v695_v21, 0.0  ;;  %v804_v41 = vadd.f32 %v803_v8, %v2498_v43 }
 0x267   :  { %v844_v59 = vmul.f32 %v2506_v34, %v2506_v34 }
 0x268   :  { %v805_v62 = vadd.f32 %v804_v41, %v2510_v55  ;;  %v843_v58 = vmul.f32 %v2510_v55, %v2510_v55  ;;  %v873_v36 = vadd.f32 %v872_v30, %v842_v47  ;;  %v1594_v53 = vpop.f32.mrb[38].mxu1 }
 0x269   :  { %v705_v52 = vpop.f32.mrb[39].mxu1  ;;  %v2518_v2 = vmax.f32 %v1594_v53, 0.0 }
 0x26a   :  { %v874_v1 = vadd.f32 %v873_v36, %v843_v58  ;;  %v2520_v60 = vmax.f32 %v705_v52, 0.0  ;;  %v806_v13 = vadd.f32 %v805_v62, %v2506_v34 }
 0x26b   :  { %v846_v16 = vmul.f32 %v2518_v2, %v2518_v2 }
 0x26c   :  { %v807_v5 = vadd.f32 %v806_v13, %v2520_v60  ;;  %v845_v33 = vmul.f32 %v2520_v60, %v2520_v60  ;;  %v875_v6 = vadd.f32 %v874_v1, %v844_v59  ;;  %v1597_v7 = vpop.f32.mrb[40].mxu1 }
 0x26d   :  { %v2526_v24 = vmax.f32 %v1597_v7, 0.0  ;;  %v715_v46 = vpop.f32.mrb[41].mxu1 }
 0x26e   :  { %v876_v25 = vadd.f32 %v875_v6, %v845_v33  ;;  %v2530_v3 = vmax.f32 %v715_v46, 0.0  ;;  %v808_v23 = vadd.f32 %v807_v5, %v2518_v2 }
 0x26f   :  { %v848_v35 = vmul.f32 %v2526_v24, %v2526_v24 }
 0x270   :  { %v809_v14 = vadd.f32 %v808_v23, %v2530_v3  ;;  %v847_v38 = vmul.f32 %v2530_v3, %v2530_v3  ;;  %v877_v32 = vadd.f32 %v876_v25, %v846_v16  ;;  %v1600_v31 = vpop.f32.mrb[42].mxu1 }
 0x271   :  { %v725_v39 = vpop.f32.mrb[43].mxu1  ;;  %v2538_v50 = vmax.f32 %v1600_v31, 0.0 }
 0x272   :  { %v878_v37 = vadd.f32 %v877_v32, %v847_v38  ;;  %v2540_v49 = vmax.f32 %v725_v39, 0.0  ;;  %v810_v57 = vadd.f32 %v809_v14, %v2526_v24 }
 0x273   :  { %v850_v21 = vmul.f32 %v2538_v50, %v2538_v50 }
 0x274   :  { %v811_v44 = vadd.f32 %v810_v57, %v2540_v49  ;;  %v849_v45 = vmul.f32 %v2540_v49, %v2540_v49  ;;  %v879_v8 = vadd.f32 %v878_v37, %v848_v35  ;;  %v1603_v18 = vpop.f32.mrb[44].mxu1 }
 0x275   :  { %v2546_v22 = vmax.f32 %v1603_v18, 0.0  ;;  %v735_v48 = vpop.f32.mrb[45].mxu1 }
 0x276   :  { %v880_v47 = vadd.f32 %v879_v8, %v849_v45  ;;  %v2550_v30 = vmax.f32 %v735_v48, 0.0  ;;  %v812_v41 = vadd.f32 %v811_v44, %v2538_v50 }
 0x277   :  { %v852_v59 = vmul.f32 %v2546_v22, %v2546_v22 }
 0x278   :  { %v813_v62 = vadd.f32 %v812_v41, %v2550_v30  ;;  %v851_v58 = vmul.f32 %v2550_v30, %v2550_v30  ;;  %v881_v36 = vadd.f32 %v880_v47, %v850_v21  ;;  %v1606_v53 = vpop.f32.mrb[46].mxu1 }
 0x279   :  { %v745_v52 = vpop.f32.mrb[47].mxu1  ;;  %v2558_v13 = vmax.f32 %v1606_v53, 0.0  ;;  %v907_v53 = vsub.s32 2, %v2255_v28 }
 0x27a   :  { %v882_v1 = vadd.f32 %v881_v36, %v851_v58  ;;  %v784_v5 = vmax.f32 %v745_v52, 0.0  ;;  %v814_v33 = vadd.f32 %v813_v62, %v2546_v22 }
 0x27b   :  { %v854_v16 = vmul.f32 %v2558_v13, %v2558_v13 }
 0x27c   :  { %v815_v6 = vadd.f32 %v814_v33, %v784_v5  ;;  %v853_v7 = vmul.f32 %v784_v5, %v784_v5  ;;  %v883_v46 = vadd.f32 %v882_v1, %v852_v59 }
 0x27e   :  { %v816_v25 = vadd.f32 %v815_v6, %v2558_v13  ;;  %v884_v23 = vadd.f32 %v883_v46, %v853_v7  ;;  %v943_v6 = vsub.s32 3, %v2255_v28 }
 0x280   :  { %v817_v14 = vrot.slane %v816_v25, 4  ;;  %v885_v38 = vadd.f32 %v884_v23, %v854_v16 }
 0x282   :  { %v818_v32 = vadd.f32 %v817_v14, %v816_v25  ;;  %v886_v31 = vrot.slane %v885_v38, 4 }
 0x284   :  { %v819_v35 = vrot.slane %v818_v32, 2  ;;  %v887_v39 = vadd.f32 %v886_v31, %v885_v38 }
 0x286   :  { %v820_v37 = vadd.f32 %v819_v35, %v818_v32  ;;  %v888_v57 = vrot.slane %v887_v39, 2 }
 0x288   :  { %v821_v44 = vrot.slane %v820_v37, 1  ;;  %v889_v45 = vadd.f32 %v888_v57, %v887_v39 }
 0x28a   :  { %v822_v8 = vadd.f32 %v821_v44, %v820_v37  ;;  %v890_v18 = vrot.slane %v889_v45, 1 }
 0x28c   :  { %v891_v48 = vadd.f32 %v890_v18, %v889_v45  ;;  %v892_v21 = vmul.f32 0.00390625, %v822_v8 }
 0x28e   :  { %v893_v47 = vmul.f32 0.00390625, %v891_v48  ;;  %v894_v41 = vmul.f32 %v892_v21, %v892_v21 }
 0x290   :  { %v895_v62 = vsub.f32 %v893_v47, %v894_v41 }
 0x292   :  { %v896_v58 = vmax.f32 %v895_v62, 0.0 }
 0x294   :  { %v897_v36 = vadd.f32 1e-05, %v896_v58 }
 0x296   :  { %1804 = vrsqrt.f32 %v897_v36 }
 0x2a0   :  { %v1805_v59 = vpop.eup %1804 }
 0x2a1   :  { %v899_v52 = vmul.f32 %v1805_v59, %v2253_v11 }
 0x2a3   :  { %v900_v1 = vmul.f32 %v899_v52, %v892_v21  ;;  %v908_v33 = vrot.slane %v899_v52, %v907_v53 }
 0x2a5   :  { %v902_v7 = vrot.slane %v900_v1, 7  ;;  %v2567_v46 = vmul.f32 %v908_v33, %v784_v5  ;;  %v909_v16 = vmul.f32 %v908_v33, %v2411_v12  ;;  %v910_v25 = vmul.f32 %v908_v33, %v2409_v10 }
 0x2a6   :  { %v911_v23 = vmul.f32 %v908_v33, %v2421_v15  ;;  %v912_v14 = vmul.f32 %v908_v33, %v2419_v9  ;;  %v913_v38 = vmul.f32 %v908_v33, %v2430_v17  ;;  %v914_v32 = vmul.f32 %v908_v33, %v2426_v61 }
 0x2a7   :  { %v904_v31 = vsub.f32 %v2253_v11, %v902_v7  ;;  %v915_v35 = vmul.f32 %v908_v33, %v2440_v40  ;;  %v916_v39 = vmul.f32 %v908_v33, %v2438_v42  ;;  %v917_v5 = vmul.f32 %v908_v33, %v2450_v27 }
 0x2a8   :  { %v918_v12 = vmul.f32 %v908_v33, %v2446_v63  ;;  %v919_v10 = vmul.f32 %v908_v33, %v2460_v29  ;;  %v920_v15 = vmul.f32 %v908_v33, %v2458_v56  ;;  %v921_v9 = vmul.f32 %v908_v33, %v2470_v0 }
 0x2a9   :  { %v944_v37 = vrot.slane %v904_v31, %v943_v6  ;;  %v922_v17 = vmul.f32 %v908_v33, %v2466_v20  ;;  %v923_v61 = vmul.f32 %v908_v33, %v2480_v51  ;;  %v924_v57 = vmul.f32 %v908_v33, %v2478_v54 }
 0x2aa   :  { %v925_v40 = vmul.f32 %v908_v33, %v2490_v19  ;;  %v926_v42 = vmul.f32 %v908_v33, %v2486_v26  ;;  %v927_v27 = vmul.f32 %v908_v33, %v2500_v4  ;;  %v928_v63 = vmul.f32 %v908_v33, %v2498_v43 }
 0x2ab   :  { %v929_v29 = vmul.f32 %v908_v33, %v2510_v55  ;;  %v930_v56 = vmul.f32 %v908_v33, %v2506_v34  ;;  %v931_v0 = vmul.f32 %v908_v33, %v2520_v60  ;;  %v932_v20 = vmul.f32 %v908_v33, %v2518_v2 }
 0x2ac   :  { %v933_v51 = vmul.f32 %v908_v33, %v2530_v3  ;;  %v934_v54 = vmul.f32 %v908_v33, %v2526_v24  ;;  %v935_v19 = vmul.f32 %v908_v33, %v2540_v49  ;;  %v936_v26 = vmul.f32 %v908_v33, %v2538_v50 }
 0x2ad   :  { %v937_v4 = vmul.f32 %v908_v33, %v2550_v30  ;;  %v938_v43 = vmul.f32 %v908_v33, %v2546_v22  ;;  %v940_v55 = vmul.f32 %v908_v33, %v2558_v13  ;;  %v946_v44 = vadd.f32 %v944_v37, %v910_v25 }
 0x2ae   :  { %v945_v34 = vadd.f32 %v944_v37, %v909_v16  ;;  %v947_v45 = vadd.f32 %v944_v37, %v911_v23  ;;  %v948_v60 = vadd.f32 %v944_v37, %v912_v14  ;;  %v949_v8 = vadd.f32 %v944_v37, %v913_v38 }
 0x2af   :  { %v950_v2 = vadd.f32 %v944_v37, %v914_v32  ;;  %v951_v18 = vadd.f32 %v944_v37, %v915_v35  ;;  %v952_v3 = vadd.f32 %v944_v37, %v916_v39  ;;  %v953_v48 = vadd.f32 %v944_v37, %v917_v5 }
 0x2b0   :  { %1639 = vmatprep.mubr.f32.mxu0 %v945_v34  ;;  %v954_v24 = vadd.f32 %v944_v37, %v918_v12  ;;  %v955_v49 = vadd.f32 %v944_v37, %v919_v10  ;;  %v956_v21 = vadd.f32 %v944_v37, %v920_v15  ;;  %v957_v50 = vadd.f32 %v944_v37, %v921_v9 }
 0x2b1   :  { %1640 = vmatmul.mubr.f32.vlgmr.msra.gmra.mrb[16].mxu0 %v946_v44  ;;  %v958_v30 = vadd.f32 %v944_v37, %v922_v17  ;;  %v959_v47 = vadd.f32 %v944_v37, %v923_v61  ;;  %v960_v22 = vadd.f32 %v944_v37, %v924_v57  ;;  %v961_v41 = vadd.f32 %v944_v37, %v925_v40 }
 0x2b2   :  { %1642 = vmatprep.mubr.f32.mxu0 %v947_v45  ;;  %v962_v13 = vadd.f32 %v944_v37, %v926_v42  ;;  %v963_v62 = vadd.f32 %v944_v37, %v927_v27  ;;  %v964_v58 = vadd.f32 %v944_v37, %v928_v63  ;;  %v965_v36 = vadd.f32 %v944_v37, %v929_v29 }
 0x2b3   :  { %v966_v53 = vadd.f32 %v944_v37, %v930_v56  ;;  %v967_v59 = vadd.f32 %v944_v37, %v931_v0  ;;  %v968_v52 = vadd.f32 %v944_v37, %v932_v20  ;;  %v969_v1 = vadd.f32 %v944_v37, %v933_v51 }
 0x2b4   :  { %v970_v33 = vadd.f32 %v944_v37, %v934_v54  ;;  %v971_v6 = vadd.f32 %v944_v37, %v935_v19  ;;  %v972_v7 = vadd.f32 %v944_v37, %v936_v26  ;;  %v973_v16 = vadd.f32 %v944_v37, %v937_v4 }
 0x2b5   :  { %1643 = vmatmul.mubr.f32.gmra.mrb[18].mxu0 %v948_v60  ;;  %v974_v25 = vadd.f32 %v944_v37, %v938_v43  ;;  %v975_v23 = vadd.f32 %v944_v37, %v2567_v46  ;;  %v976_v14 = vadd.f32 %v944_v37, %v940_v55  ;;  %v996_v46 = vsub.s32 4, %v2255_v28 }
 0x2b6   :  { %1645 = vmatprep.mubr.f32.mxu0 %v949_v8 }
 0x2b7   :  { %v2604_v38 = vrot.slane %v2253_v11, %v996_v46 }
 0x2b9   :  { %1646 = vmatmul.mubr.f32.gmra.mrb[20].mxu0 %v950_v2 }
 0x2ba   :  { %1648 = vmatprep.mubr.f32.mxu0 %v951_v18 }
 0x2bd   :  { %1649 = vmatmul.mubr.f32.gmra.mrb[22].mxu0 %v952_v3 }
 0x2be   :  { %1651 = vmatprep.mubr.f32.mxu0 %v953_v48 }
 0x2c1   :  { %1652 = vmatmul.mubr.f32.gmra.mrb[24].mxu0 %v954_v24 }
 0x2c2   :  { %1654 = vmatprep.mubr.f32.mxu0 %v955_v49 }
 0x2c5   :  { %1655 = vmatmul.mubr.f32.gmra.mrb[26].mxu0 %v956_v21 }
 0x2c6   :  { %1657 = vmatprep.mubr.f32.mxu0 %v957_v50 }
 0x2c9   :  { %1658 = vmatmul.mubr.f32.gmra.mrb[28].mxu0 %v958_v30 }
 0x2ca   :  { %1660 = vmatprep.mubr.f32.mxu0 %v959_v47 }
 0x2cd   :  { %1661 = vmatmul.mubr.f32.gmra.mrb[30].mxu0 %v960_v22 }
 0x2ce   :  { %1663 = vmatprep.mubr.f32.mxu0 %v961_v41 }
 0x2d1   :  { %1664 = vmatmul.mubr.f32.gmra.mrb[32].mxu0 %v962_v13 }
 0x2d2   :  { %1666 = vmatprep.mubr.f32.mxu0 %v963_v62 }
 0x2d5   :  { %1667 = vmatmul.mubr.f32.gmra.mrb[34].mxu0 %v964_v58 }
 0x2d6   :  { %1669 = vmatprep.mubr.f32.mxu0 %v965_v36 }
 0x2d9   :  { %1670 = vmatmul.mubr.f32.gmra.mrb[36].mxu0 %v966_v53 }
 0x2da   :  { %1672 = vmatprep.mubr.f32.mxu0 %v967_v59 }
 0x2dd   :  { %1673 = vmatmul.mubr.f32.gmra.mrb[38].mxu0 %v968_v52 }
 0x2de   :  { %1675 = vmatprep.mubr.f32.mxu0 %v969_v1 }
 0x2e1   :  { %1676 = vmatmul.mubr.f32.gmra.mrb[40].mxu0 %v970_v33 }
 0x2e2   :  { %1678 = vmatprep.mubr.f32.mxu0 %v971_v6 }
 0x2e5   :  { %1679 = vmatmul.mubr.f32.gmra.mrb[42].mxu0 %v972_v7 }
 0x2e6   :  { %1681 = vmatprep.mubr.f32.mxu0 %v973_v16 }
 0x2e9   :  { %1682 = vmatmul.mubr.f32.gmra.mrb[44].mxu0 %v974_v25 }
 0x2ea   :  { %1684 = vmatprep.mubr.f32.mxu0 %v975_v23 }
 0x2ed   :  { %1685 = vmatmul.mubr.f32.gmra.mrb[46].mxu0 %v976_v14 }
 0x384   :  { %v1641_v32 = vpop.f32.mrb[16].mxu0 }
 0x385   :  { %v1070_v31 = vadd.f32 %v1641_v32, %v2604_v38  ;;  %v1064_v35 = vpop.f32.mrb[17].mxu0 }
 0x386   :  { %v1065_v39 = vadd.f32 %v1064_v35, %v2604_v38 }
 0x387   :  { %1224 = vst [vmem:[#allocation2 + $0x8] sm:$0xff] %v1070_v31 }
 0x388   :  { %1223 = vst [vmem:[#allocation2] sm:$0xff] %v1065_v39  ;;  %v1644_v5 = vpop.f32.mrb[18].mxu0 }
 0x389   :  { %v1080_v12 = vadd.f32 %v1644_v5, %v2604_v38  ;;  %v1074_v10 = vpop.f32.mrb[19].mxu0 }
 0x38a   :  { %v1075_v15 = vadd.f32 %v1074_v10, %v2604_v38 }
 0x38b   :  { %1226 = vst [vmem:[#allocation2 + $0x18] sm:$0xff] %v1080_v12 }
 0x38c   :  { %1225 = vst [vmem:[#allocation2 + $0x10] sm:$0xff] %v1075_v15  ;;  %v1647_v28 = vpop.f32.mrb[20].mxu0 }
 0x38d   :  { %v1090_v11 = vadd.f32 %v1647_v28, %v2604_v38  ;;  %v1084_v9 = vpop.f32.mrb[21].mxu0 }
 0x38e   :  { %v1085_v37 = vadd.f32 %v1084_v9, %v2604_v38 }
 0x38f   :  { %1228 = vst [vmem:[#allocation2 + $0x28] sm:$0xff] %v1090_v11 }
 0x390   :  { %1227 = vst [vmem:[#allocation2 + $0x20] sm:$0xff] %v1085_v37  ;;  %v1650_v17 = vpop.f32.mrb[22].mxu0 }
 0x391   :  { %v1100_v61 = vadd.f32 %v1650_v17, %v2604_v38  ;;  %v1094_v57 = vpop.f32.mrb[23].mxu0 }
 0x392   :  { %v1095_v40 = vadd.f32 %v1094_v57, %v2604_v38 }
 0x393   :  { %1230 = vst [vmem:[#allocation2 + $0x38] sm:$0xff] %v1100_v61 }
 0x394   :  { %1229 = vst [vmem:[#allocation2 + $0x30] sm:$0xff] %v1095_v40  ;;  %v1653_v42 = vpop.f32.mrb[24].mxu0 }
 0x395   :  { %v1110_v27 = vadd.f32 %v1653_v42, %v2604_v38  ;;  %v1104_v63 = vpop.f32.mrb[25].mxu0 }
 0x396   :  { %v1105_v29 = vadd.f32 %v1104_v63, %v2604_v38 }
 0x397   :  { %1232 = vst [vmem:[#allocation2 + $0x48] sm:$0xff] %v1110_v27 }
 0x398   :  { %1231 = vst [vmem:[#allocation2 + $0x40] sm:$0xff] %v1105_v29  ;;  %v1656_v56 = vpop.f32.mrb[26].mxu0 }
 0x399   :  { %v1120_v0 = vadd.f32 %v1656_v56, %v2604_v38  ;;  %v1114_v20 = vpop.f32.mrb[27].mxu0 }
 0x39a   :  { %v1115_v51 = vadd.f32 %v1114_v20, %v2604_v38 }
 0x39b   :  { %1234 = vst [vmem:[#allocation2 + $0x58] sm:$0xff] %v1120_v0 }
 0x39c   :  { %1233 = vst [vmem:[#allocation2 + $0x50] sm:$0xff] %v1115_v51  ;;  %v1659_v54 = vpop.f32.mrb[28].mxu0 }
 0x39d   :  { %v1130_v19 = vadd.f32 %v1659_v54, %v2604_v38  ;;  %v1124_v26 = vpop.f32.mrb[29].mxu0 }
 0x39e   :  { %v1125_v4 = vadd.f32 %v1124_v26, %v2604_v38 }
 0x39f   :  { %1236 = vst [vmem:[#allocation2 + $0x68] sm:$0xff] %v1130_v19 }
 0x3a0   :  { %1235 = vst [vmem:[#allocation2 + $0x60] sm:$0xff] %v1125_v4  ;;  %v1662_v43 = vpop.f32.mrb[30].mxu0 }
 0x3a1   :  { %v1140_v55 = vadd.f32 %v1662_v43, %v2604_v38  ;;  %v1134_v44 = vpop.f32.mrb[31].mxu0 }
 0x3a2   :  { %v1135_v34 = vadd.f32 %v1134_v44, %v2604_v38 }
 0x3a3   :  { %1238 = vst [vmem:[#allocation2 + $0x78] sm:$0xff] %v1140_v55 }
 0x3a4   :  { %1237 = vst [vmem:[#allocation2 + $0x70] sm:$0xff] %v1135_v34  ;;  %v1665_v45 = vpop.f32.mrb[32].mxu0 }
 0x3a5   :  { %v1150_v60 = vadd.f32 %v1665_v45, %v2604_v38  ;;  %v1144_v8 = vpop.f32.mrb[33].mxu0 }
 0x3a6   :  { %v1145_v2 = vadd.f32 %v1144_v8, %v2604_v38 }
 0x3a7   :  { %1240 = vst [vmem:[#allocation2 + $0x88] sm:$0xff] %v1150_v60 }
 0x3a8   :  { %1239 = vst [vmem:[#allocation2 + $0x80] sm:$0xff] %v1145_v2  ;;  %v1668_v18 = vpop.f32.mrb[34].mxu0 }
 0x3a9   :  { %v1160_v3 = vadd.f32 %v1668_v18, %v2604_v38  ;;  %v1154_v48 = vpop.f32.mrb[35].mxu0 }
 0x3aa   :  { %v1155_v24 = vadd.f32 %v1154_v48, %v2604_v38 }
 0x3ab   :  { %1242 = vst [vmem:[#allocation2 + $0x98] sm:$0xff] %v1160_v3 }
 0x3ac   :  { %1241 = vst [vmem:[#allocation2 + $0x90] sm:$0xff] %v1155_v24  ;;  %v1671_v49 = vpop.f32.mrb[36].mxu0 }
 0x3ad   :  { %v1170_v21 = vadd.f32 %v1671_v49, %v2604_v38  ;;  %v1164_v50 = vpop.f32.mrb[37].mxu0 }
 0x3ae   :  { %v1165_v30 = vadd.f32 %v1164_v50, %v2604_v38 }
 0x3af   :  { %1244 = vst [vmem:[#allocation2 + $0xa8] sm:$0xff] %v1170_v21 }
 0x3b0   :  { %1243 = vst [vmem:[#allocation2 + $0xa0] sm:$0xff] %v1165_v30  ;;  %v1674_v47 = vpop.f32.mrb[38].mxu0 }
 0x3b1   :  { %v1180_v22 = vadd.f32 %v1674_v47, %v2604_v38  ;;  %v1174_v41 = vpop.f32.mrb[39].mxu0 }
 0x3b2   :  { %v1175_v13 = vadd.f32 %v1174_v41, %v2604_v38 }
 0x3b3   :  { %1246 = vst [vmem:[#allocation2 + $0xb8] sm:$0xff] %v1180_v22 }
 0x3b4   :  { %1245 = vst [vmem:[#allocation2 + $0xb0] sm:$0xff] %v1175_v13  ;;  %v1677_v62 = vpop.f32.mrb[40].mxu0 }
 0x3b5   :  { %v1190_v58 = vadd.f32 %v1677_v62, %v2604_v38  ;;  %v1184_v36 = vpop.f32.mrb[41].mxu0 }
 0x3b6   :  { %v1185_v53 = vadd.f32 %v1184_v36, %v2604_v38 }
 0x3b7   :  { %1248 = vst [vmem:[#allocation2 + $0xc8] sm:$0xff] %v1190_v58 }
 0x3b8   :  { %1247 = vst [vmem:[#allocation2 + $0xc0] sm:$0xff] %v1185_v53  ;;  %v1680_v59 = vpop.f32.mrb[42].mxu0 }
 0x3b9   :  { %v1200_v52 = vadd.f32 %v1680_v59, %v2604_v38  ;;  %v1194_v1 = vpop.f32.mrb[43].mxu0 }
 0x3ba   :  { %v1195_v33 = vadd.f32 %v1194_v1, %v2604_v38 }
 0x3bb   :  { %1250 = vst [vmem:[#allocation2 + $0xd8] sm:$0xff] %v1200_v52 }
 0x3bc   :  { %1249 = vst [vmem:[#allocation2 + $0xd0] sm:$0xff] %v1195_v33  ;;  %v1683_v6 = vpop.f32.mrb[44].mxu0 }
 0x3bd   :  { %v1210_v7 = vadd.f32 %v1683_v6, %v2604_v38  ;;  %v1204_v16 = vpop.f32.mrb[45].mxu0 }
 0x3be   :  { %v1205_v25 = vadd.f32 %v1204_v16, %v2604_v38 }
 0x3bf   :  { %1252 = vst [vmem:[#allocation2 + $0xe8] sm:$0xff] %v1210_v7 }
 0x3c0   :  { %1251 = vst [vmem:[#allocation2 + $0xe0] sm:$0xff] %v1205_v25  ;;  %v1686_v23 = vpop.f32.mrb[46].mxu0 }
 0x3c1   :  { %v1220_v14 = vadd.f32 %v1686_v23, %v2604_v38  ;;  %v1214_v46 = vpop.f32.mrb[47].mxu0 }
 0x3c2   :  { %v1215_v32 = vadd.f32 %v1214_v46, %v2604_v38 }
 0x3c3   :  { %1254 = vst [vmem:[#allocation2 + $0xf8] sm:$0xff] %v1220_v14 }
 0x3c4   :  { %1253 = vst [vmem:[#allocation2 + $0xf0] sm:$0xff] %v1215_v32 }
 0x3c5   :  { %1817 = shalt.err (!%p1814_p4)
}
 0x3c6   :  { %s1818_s11 = scalar_lea.hbm %s2653_s3, 4096 }
 0x3c7   :  { %p1819_p5 = scmp.ne.s32.totalorder %s2653_s3, %s1818_s11  ;;  %p1822_p6 = scmp.lt.u32.totalorder %s1818_s11, %s2653_s3 }
 0x3c9   :  { %p1824_p7 = pnand %p1822_p6, %p1819_p5 }
 0x3cb   :  { %1827 = shalt.err (!%p1824_p7)
}
 0x3cc   :  { %s1831_s16 = smov 128   ;;  %s1832_s17 = smov 8  }
 0x3cd   :  { %1266 = dma.vmem_to_hbm [thread:$0]  %s1261_s0, 4096, %s2653_s3, [#allocation3], %s1831_s16, %s1831_s16, %s1832_s17  }
 0x3ce   :  { %1828 = dma.done.wait [#allocation3], 4096  }
 0x3cf   :  { %1829 = vsyncadd [#allocation3], 4294963200 }
 0x3d0   :  { %1270 = vsyncpa [#allocation3], 1 }

</bundles_post_ra>
